<compile_context>
chip_gen: v5e
topology: v5e:2x2
jax: 0.10.0
libtpu: 0.0.40
codegen_flags: <defaults>
</compile_context>

<pallas_src>
import numpy as np
import jax
import jax.numpy as jnp
from jax.experimental import pallas as pl
from jax.experimental.pallas import tpu as pltpu


# ----------------------------------------------------------------------------
# Host-side parameter setup (glue): null-space basis of the cubic-spline
# continuity constraints, mirroring CubicSpline._compute_basis (uses SVD).
# ----------------------------------------------------------------------------
def compute_basis_np(num_edges: int) -> np.ndarray:
    t = np.linspace(0.0, 1.0, num_edges + 1, dtype=np.float64)[1:-1]
    C = 4 * num_edges
    end_points = np.zeros((2, C), dtype=np.float64)
    end_points[0, 0] = 1.0
    end_points[1, -4:] = 1.0
    zeroth = np.zeros((num_edges - 1, C), dtype=np.float64)
    first = np.zeros((num_edges - 1, C), dtype=np.float64)
    second = np.zeros((num_edges - 1, C), dtype=np.float64)
    for i in range(num_edges - 1):
        si = 4 * i
        f0 = np.array([1.0, t[i], t[i] ** 2, t[i] ** 3])
        f1 = np.array([0.0, 1.0, 2.0 * t[i], 3.0 * t[i] ** 2])
        f2 = np.array([0.0, 0.0, 6.0 * t[i], 2.0])
        zeroth[i, si:si + 4] = f0
        zeroth[i, si + 4:si + 8] = -f0
        first[i, si:si + 4] = f1
        first[i, si + 4:si + 8] = -f1
        second[i, si:si + 4] = f2
        second[i, si + 4:si + 8] = -f2
    constraints = np.concatenate([end_points, zeroth, first, second], axis=0)
    # torch.svd(..., some=False): basis = V[:, num_singular_values:]
    _, s, vh = np.linalg.svd(constraints, full_matrices=True)
    basis = vh[s.shape[0]:, :].T  # (C, C - num_constraints) = (16, 5)
    return basis.astype(np.float32)


# ----------------------------------------------------------------------------
# Pallas kernel: masked coefficient select + Horner cubic + straight line.
# All work on the VPU in a (D, t_tile) layout (D sublanes, time on lanes).
# ----------------------------------------------------------------------------
def cubic_spline_kernel(t_ref, begin_ref, end_ref, coeffs_ref, out_ref):
    # t_ref:      (1, 1, tT)   sample positions in [0, 1]
    # begin_ref:  (1, D, 1)
    # end_ref:    (1, D, 1)
    # coeffs_ref: (1, D, C)    C = 4 * num_edges; coefficient c of dim d at [d, c]
    # out_ref:    (1, D, tT)
    t = t_ref[0]            # (1, tT)
    begin = begin_ref[0]    # (D, 1)
    end = end_ref[0]        # (D, 1)
    coeffs = coeffs_ref[0]  # (D, C)

    C = coeffs.shape[1]
    degree = 4
    num_edges = C // degree

    # Active segment per sample: floor(t * E) clamped to [0, E-1], as int32.
    # (Samples exactly at an interior knot land in the right-hand segment,
    # matching the reference's floor semantics.)
    idx = jnp.clip(jnp.floor(t * num_edges).astype(jnp.int32), 0, num_edges - 1)

    # Per-degree coefficient of the active edge via a masked sum over the
    # static, tiny edge count.  Pure VPU broadcasts: (D,1) * (1,tT) -> (D,tT).
    masks = [(idx == e).astype(jnp.float32) for e in range(num_edges)]  # (1, tT) each
    c_sel = []
    for k in range(degree):
        acc = coeffs[:, k:k + 1] * masks[0]
        for e in range(1, num_edges):
            j = degree * e + k
            acc = acc + coeffs[:, j:j + 1] * masks[e]
        c_sel.append(acc)   # (D, tT)

    # Horner evaluation of the cubic plus the straight-line term.
    poly = ((c_sel[3] * t + c_sel[2]) * t + c_sel[1]) * t + c_sel[0]  # (D, tT)
    line = (end - begin) * t + begin                                  # (D, tT)
    out_ref[0, :, :] = (poly + line).astype(out_ref.dtype)


def cubic_spline_forward(t, begin, end, basis, params, *, t_tile=None):
    """CubicSpline.forward: spline(t) = basis-poly(t) + straight_line(t)."""
    no_batch = t.ndim == 1
    B = params.shape[0]
    if no_batch:
        t = jnp.broadcast_to(t[None, :], (B, t.shape[0]))
    B, T = t.shape
    D = begin.shape[-1]
    C = basis.shape[0]

    # Hoisted tiny contraction (K = num_nodes): coeffs_t[b, d, c] = sum_k basis[c,k] * params[b,k,d].
    coeffs_t = jnp.einsum('ck,bkd->bdc', basis, params).astype(jnp.float32)  # (B, D, C)

    if t_tile is None:
        # 512-lane tiles keep double-buffered (1, D, tT) blocks tiny even under
        # v7x's 64 MiB VMEM while giving lane-dense compute/stores for large T.
        t_tile = T if T <= 512 else 512
    if T % t_tile != 0:
        # TODO(synk): support ragged last tile (pl.cdiv grid + masked tail) for non-divisible large T.
        t_tile = T

    grid = (B, T // t_tile)

    t3 = t[:, None, :].astype(jnp.float32)           # (B, 1, T)
    begin3 = begin[:, :, None].astype(jnp.float32)   # (B, D, 1)
    end3 = end[:, :, None].astype(jnp.float32)       # (B, D, 1)

    out_dt = pl.pallas_call(
        cubic_spline_kernel,
        out_shape=jax.ShapeDtypeStruct((B, D, T), jnp.float32),
        grid=grid,
        in_specs=[
            pl.BlockSpec((1, 1, t_tile), lambda b, i: (b, 0, i)),
            pl.BlockSpec((1, D, 1), lambda b, i: (b, 0, 0)),
            pl.BlockSpec((1, D, 1), lambda b, i: (b, 0, 0)),
            pl.BlockSpec((1, D, C), lambda b, i: (b, 0, 0)),
        ],
        out_specs=pl.BlockSpec((1, D, t_tile), lambda b, i: (b, 0, i)),
        compiler_params=pltpu.CompilerParams(
            dimension_semantics=("parallel", "parallel")),
    )(t3, begin3, end3, coeffs_t)

    out = jnp.transpose(out_dt, (0, 2, 1))  # (B, T, D) — layout plumbing only.
    if no_batch and out.shape[0] == 1:      # matches the PyTorch squeeze rule
        out = out[0]
    return out


# ----------------------------------------------------------------------------
# Pure-JAX reference (mirrors the PyTorch forward) for correctness checking.
# ----------------------------------------------------------------------------
def reference_forward(t, begin, end, basis, params):
    coeffs = jnp.einsum('ck,bkd->bcd', basis, params)          # (B, C, D)
    B, C, D = coeffs.shape
    num_edges = C // 4
    coeffs = coeffs.reshape(B, num_edges, 4, D)
    idx = jnp.clip(jnp.floor(t * num_edges), 0, num_edges - 1).astype(jnp.int32)
    power = jnp.arange(4, dtype=t.dtype)
    tpow = t[..., None] ** power                                # (B, T, 4)
    coeffs_idx = coeffs[jnp.arange(B)[:, None], idx]            # (B, T, 4, D)
    poly = jnp.sum(tpow[..., None] * coeffs_idx, axis=2)        # (B, T, D)
    line = (end[:, None, :] - begin[:, None, :]) * t[..., None] + begin[:, None, :]
    return poly + line


if __name__ == "__main__":
    key = jax.random.PRNGKey(0)
    k1, k2, k3, k4 = jax.random.split(key, 4)

    B, D, T = 2, 32, 8
    num_nodes = 5
    num_edges = num_nodes - 1

    begin = jax.random.normal(k1, (B, D), dtype=jnp.float32)
    end = jax.random.normal(k2, (B, D), dtype=jnp.float32)
    basis = jnp.asarray(compute_basis_np(num_edges))                    # (16, 5)
    params = 0.1 * jax.random.normal(k3, (B, basis.shape[1], D), dtype=jnp.float32)
    t = jax.random.uniform(k4, (B, T), dtype=jnp.float32)

    out = cubic_spline_forward(t, begin, end, basis, params)
    out = jax.block_until_ready(out)

    ref = reference_forward(t, begin, end, basis, params)
    np.testing.assert_allclose(np.asarray(out), np.asarray(ref), rtol=1e-5, atol=1e-5)
    print("KERNEL_OK")
</pallas_src>

<mosaic_0001>
module attributes {stable_mosaic.version = 11 : i64} {
  func.func @cubic_spline_kernel(%arg0: i32, %arg1: i32, %arg2: memref<1x1x8xf32, #tpu.memory_space<vmem>>, %arg3: memref<1x32x1xf32, #tpu.memory_space<vmem>>, %arg4: memref<1x32x1xf32, #tpu.memory_space<vmem>>, %arg5: memref<1x32x16xf32, #tpu.memory_space<vmem>>, %arg6: memref<1x32x8xf32, #tpu.memory_space<vmem>>) attributes {dimension_semantics = [#tpu.dimension_semantics<parallel>, #tpu.dimension_semantics<parallel>], iteration_bounds = array<i64: 2, 1>, scalar_prefetch = 0 : i64, scratch_operands = 0 : i64, tpu.core_type = #tpu.core_type<tc>, window_params = [{transform_indices = @transform_0, window_bounds = array<i64: 1, 1, 8>}, {transform_indices = @transform_1, window_bounds = array<i64: 1, 32, 1>}, {transform_indices = @transform_2, window_bounds = array<i64: 1, 32, 1>}, {transform_indices = @transform_3, window_bounds = array<i64: 1, 32, 16>}, {transform_indices = @transform_4, window_bounds = array<i64: 1, 32, 8>}]} {
    %c0 = arith.constant 0 : index
    %c0_0 = arith.constant 0 : index
    %c0_1 = arith.constant 0 : index
    %0 = vector.load %arg2[%c0, %c0_0, %c0_1] : memref<1x1x8xf32, #tpu.memory_space<vmem>>, vector<1x1x8xf32>
    %1 = vector.shape_cast %0 : vector<1x1x8xf32> to vector<1x8xf32>
    %c0_2 = arith.constant 0 : index
    %c0_3 = arith.constant 0 : index
    %c0_4 = arith.constant 0 : index
    %2 = vector.load %arg3[%c0_2, %c0_3, %c0_4] : memref<1x32x1xf32, #tpu.memory_space<vmem>>, vector<1x32x1xf32>
    %3 = vector.shape_cast %2 : vector<1x32x1xf32> to vector<32x1xf32>
    %c0_5 = arith.constant 0 : index
    %c0_6 = arith.constant 0 : index
    %c0_7 = arith.constant 0 : index
    %4 = vector.load %arg4[%c0_5, %c0_6, %c0_7] : memref<1x32x1xf32, #tpu.memory_space<vmem>>, vector<1x32x1xf32>
    %5 = vector.shape_cast %4 : vector<1x32x1xf32> to vector<32x1xf32>
    %c0_8 = arith.constant 0 : index
    %c0_9 = arith.constant 0 : index
    %c0_10 = arith.constant 0 : index
    %6 = vector.load %arg5[%c0_8, %c0_9, %c0_10] : memref<1x32x16xf32, #tpu.memory_space<vmem>>, vector<1x32x16xf32>
    %7 = vector.shape_cast %6 : vector<1x32x16xf32> to vector<32x16xf32>
    %cst = arith.constant 4.000000e+00 : f32
    %8 = vector.broadcast %cst : f32 to vector<1x8xf32>
    %9 = arith.mulf %1, %8 : vector<1x8xf32>
    %10 = math.floor %9 : vector<1x8xf32>
    %11 = arith.fptosi %10 : vector<1x8xf32> to vector<1x8xi32>
    %c0_i32 = arith.constant 0 : i32
    %c3_i32 = arith.constant 3 : i32
    %12 = vector.broadcast %c0_i32 : i32 to vector<1x8xi32>
    %13 = arith.maxsi %12, %11 : vector<1x8xi32>
    %14 = vector.broadcast %c3_i32 : i32 to vector<1x8xi32>
    %15 = arith.minsi %14, %13 : vector<1x8xi32>
    %c0_i32_11 = arith.constant 0 : i32
    %16 = vector.broadcast %c0_i32_11 : i32 to vector<1x8xi32>
    %17 = arith.cmpi eq, %15, %16 : vector<1x8xi32>
    %18 = arith.extui %17 : vector<1x8xi1> to vector<1x8xi32>
    %19 = arith.sitofp %18 : vector<1x8xi32> to vector<1x8xf32>
    %c1_i32 = arith.constant 1 : i32
    %20 = vector.broadcast %c1_i32 : i32 to vector<1x8xi32>
    %21 = arith.cmpi eq, %15, %20 : vector<1x8xi32>
    %22 = arith.extui %21 : vector<1x8xi1> to vector<1x8xi32>
    %23 = arith.sitofp %22 : vector<1x8xi32> to vector<1x8xf32>
    %c2_i32 = arith.constant 2 : i32
    %24 = vector.broadcast %c2_i32 : i32 to vector<1x8xi32>
    %25 = arith.cmpi eq, %15, %24 : vector<1x8xi32>
    %26 = arith.extui %25 : vector<1x8xi1> to vector<1x8xi32>
    %27 = arith.sitofp %26 : vector<1x8xi32> to vector<1x8xf32>
    %c3_i32_12 = arith.constant 3 : i32
    %28 = vector.broadcast %c3_i32_12 : i32 to vector<1x8xi32>
    %29 = arith.cmpi eq, %15, %28 : vector<1x8xi32>
    %30 = arith.extui %29 : vector<1x8xi1> to vector<1x8xi32>
    %31 = arith.sitofp %30 : vector<1x8xi32> to vector<1x8xf32>
    %32 = vector.extract_strided_slice %7 {offsets = [0, 0], sizes = [32, 1], strides = [1, 1]} : vector<32x16xf32> to vector<32x1xf32>
    %33 = vector.broadcast %32 : vector<32x1xf32> to vector<32x8xf32>
    %34 = vector.broadcast %19 : vector<1x8xf32> to vector<32x8xf32>
    %35 = arith.mulf %33, %34 : vector<32x8xf32>
    %36 = vector.extract_strided_slice %7 {offsets = [0, 4], sizes = [32, 1], strides = [1, 1]} : vector<32x16xf32> to vector<32x1xf32>
    %37 = vector.broadcast %36 : vector<32x1xf32> to vector<32x8xf32>
    %38 = vector.broadcast %23 : vector<1x8xf32> to vector<32x8xf32>
    %39 = arith.mulf %37, %38 : vector<32x8xf32>
    %40 = arith.addf %35, %39 : vector<32x8xf32>
    %41 = vector.extract_strided_slice %7 {offsets = [0, 8], sizes = [32, 1], strides = [1, 1]} : vector<32x16xf32> to vector<32x1xf32>
    %42 = vector.broadcast %41 : vector<32x1xf32> to vector<32x8xf32>
    %43 = vector.broadcast %27 : vector<1x8xf32> to vector<32x8xf32>
    %44 = arith.mulf %42, %43 : vector<32x8xf32>
    %45 = arith.addf %40, %44 : vector<32x8xf32>
    %46 = vector.extract_strided_slice %7 {offsets = [0, 12], sizes = [32, 1], strides = [1, 1]} : vector<32x16xf32> to vector<32x1xf32>
    %47 = vector.broadcast %46 : vector<32x1xf32> to vector<32x8xf32>
    %48 = vector.broadcast %31 : vector<1x8xf32> to vector<32x8xf32>
    %49 = arith.mulf %47, %48 : vector<32x8xf32>
    %50 = arith.addf %45, %49 : vector<32x8xf32>
    %51 = vector.extract_strided_slice %7 {offsets = [0, 1], sizes = [32, 1], strides = [1, 1]} : vector<32x16xf32> to vector<32x1xf32>
    %52 = vector.broadcast %51 : vector<32x1xf32> to vector<32x8xf32>
    %53 = vector.broadcast %19 : vector<1x8xf32> to vector<32x8xf32>
    %54 = arith.mulf %52, %53 : vector<32x8xf32>
    %55 = vector.extract_strided_slice %7 {offsets = [0, 5], sizes = [32, 1], strides = [1, 1]} : vector<32x16xf32> to vector<32x1xf32>
    %56 = vector.broadcast %55 : vector<32x1xf32> to vector<32x8xf32>
    %57 = vector.broadcast %23 : vector<1x8xf32> to vector<32x8xf32>
    %58 = arith.mulf %56, %57 : vector<32x8xf32>
    %59 = arith.addf %54, %58 : vector<32x8xf32>
    %60 = vector.extract_strided_slice %7 {offsets = [0, 9], sizes = [32, 1], strides = [1, 1]} : vector<32x16xf32> to vector<32x1xf32>
    %61 = vector.broadcast %60 : vector<32x1xf32> to vector<32x8xf32>
    %62 = vector.broadcast %27 : vector<1x8xf32> to vector<32x8xf32>
    %63 = arith.mulf %61, %62 : vector<32x8xf32>
    %64 = arith.addf %59, %63 : vector<32x8xf32>
    %65 = vector.extract_strided_slice %7 {offsets = [0, 13], sizes = [32, 1], strides = [1, 1]} : vector<32x16xf32> to vector<32x1xf32>
    %66 = vector.broadcast %65 : vector<32x1xf32> to vector<32x8xf32>
    %67 = vector.broadcast %31 : vector<1x8xf32> to vector<32x8xf32>
    %68 = arith.mulf %66, %67 : vector<32x8xf32>
    %69 = arith.addf %64, %68 : vector<32x8xf32>
    %70 = vector.extract_strided_slice %7 {offsets = [0, 2], sizes = [32, 1], strides = [1, 1]} : vector<32x16xf32> to vector<32x1xf32>
    %71 = vector.broadcast %70 : vector<32x1xf32> to vector<32x8xf32>
    %72 = vector.broadcast %19 : vector<1x8xf32> to vector<32x8xf32>
    %73 = arith.mulf %71, %72 : vector<32x8xf32>
    %74 = vector.extract_strided_slice %7 {offsets = [0, 6], sizes = [32, 1], strides = [1, 1]} : vector<32x16xf32> to vector<32x1xf32>
    %75 = vector.broadcast %74 : vector<32x1xf32> to vector<32x8xf32>
    %76 = vector.broadcast %23 : vector<1x8xf32> to vector<32x8xf32>
    %77 = arith.mulf %75, %76 : vector<32x8xf32>
    %78 = arith.addf %73, %77 : vector<32x8xf32>
    %79 = vector.extract_strided_slice %7 {offsets = [0, 10], sizes = [32, 1], strides = [1, 1]} : vector<32x16xf32> to vector<32x1xf32>
    %80 = vector.broadcast %79 : vector<32x1xf32> to vector<32x8xf32>
    %81 = vector.broadcast %27 : vector<1x8xf32> to vector<32x8xf32>
    %82 = arith.mulf %80, %81 : vector<32x8xf32>
    %83 = arith.addf %78, %82 : vector<32x8xf32>
    %84 = vector.extract_strided_slice %7 {offsets = [0, 14], sizes = [32, 1], strides = [1, 1]} : vector<32x16xf32> to vector<32x1xf32>
    %85 = vector.broadcast %84 : vector<32x1xf32> to vector<32x8xf32>
    %86 = vector.broadcast %31 : vector<1x8xf32> to vector<32x8xf32>
    %87 = arith.mulf %85, %86 : vector<32x8xf32>
    %88 = arith.addf %83, %87 : vector<32x8xf32>
    %89 = vector.extract_strided_slice %7 {offsets = [0, 3], sizes = [32, 1], strides = [1, 1]} : vector<32x16xf32> to vector<32x1xf32>
    %90 = vector.broadcast %89 : vector<32x1xf32> to vector<32x8xf32>
    %91 = vector.broadcast %19 : vector<1x8xf32> to vector<32x8xf32>
    %92 = arith.mulf %90, %91 : vector<32x8xf32>
    %93 = vector.extract_strided_slice %7 {offsets = [0, 7], sizes = [32, 1], strides = [1, 1]} : vector<32x16xf32> to vector<32x1xf32>
    %94 = vector.broadcast %93 : vector<32x1xf32> to vector<32x8xf32>
    %95 = vector.broadcast %23 : vector<1x8xf32> to vector<32x8xf32>
    %96 = arith.mulf %94, %95 : vector<32x8xf32>
    %97 = arith.addf %92, %96 : vector<32x8xf32>
    %98 = vector.extract_strided_slice %7 {offsets = [0, 11], sizes = [32, 1], strides = [1, 1]} : vector<32x16xf32> to vector<32x1xf32>
    %99 = vector.broadcast %98 : vector<32x1xf32> to vector<32x8xf32>
    %100 = vector.broadcast %27 : vector<1x8xf32> to vector<32x8xf32>
    %101 = arith.mulf %99, %100 : vector<32x8xf32>
    %102 = arith.addf %97, %101 : vector<32x8xf32>
    %103 = vector.extract_strided_slice %7 {offsets = [0, 15], sizes = [32, 1], strides = [1, 1]} : vector<32x16xf32> to vector<32x1xf32>
    %104 = vector.broadcast %103 : vector<32x1xf32> to vector<32x8xf32>
    %105 = vector.broadcast %31 : vector<1x8xf32> to vector<32x8xf32>
    %106 = arith.mulf %104, %105 : vector<32x8xf32>
    %107 = arith.addf %102, %106 : vector<32x8xf32>
    %108 = vector.broadcast %1 : vector<1x8xf32> to vector<32x8xf32>
    %109 = arith.mulf %107, %108 : vector<32x8xf32>
    %110 = arith.addf %109, %88 : vector<32x8xf32>
    %111 = vector.broadcast %1 : vector<1x8xf32> to vector<32x8xf32>
    %112 = arith.mulf %110, %111 : vector<32x8xf32>
    %113 = arith.addf %112, %69 : vector<32x8xf32>
    %114 = vector.broadcast %1 : vector<1x8xf32> to vector<32x8xf32>
    %115 = arith.mulf %113, %114 : vector<32x8xf32>
    %116 = arith.addf %115, %50 : vector<32x8xf32>
    %117 = arith.subf %5, %3 : vector<32x1xf32>
    %118 = vector.broadcast %117 : vector<32x1xf32> to vector<32x8xf32>
    %119 = vector.broadcast %1 : vector<1x8xf32> to vector<32x8xf32>
    %120 = arith.mulf %118, %119 : vector<32x8xf32>
    %121 = vector.broadcast %3 : vector<32x1xf32> to vector<32x8xf32>
    %122 = arith.addf %120, %121 : vector<32x8xf32>
    %123 = arith.addf %116, %122 : vector<32x8xf32>
    %c0_13 = arith.constant 0 : index
    %c0_14 = arith.constant 0 : index
    %c0_15 = arith.constant 0 : index
    %124 = vector.load %arg6[%c0_13, %c0_14, %c0_15] : memref<1x32x8xf32, #tpu.memory_space<vmem>>, vector<1x32x8xf32>
    %125 = vector.shape_cast %124 : vector<1x32x8xf32> to vector<32x8xf32>
    %126 = vector.shape_cast %123 : vector<32x8xf32> to vector<1x32x8xf32>
    tpu.vector_store %arg6[%c0_13, %c0_14, %c0_15], %126 {strides = array<i32>} : memref<1x32x8xf32, #tpu.memory_space<vmem>>, vector<1x32x8xf32>,
    return
  }
  func.func @transform_0(%arg0: i32, %arg1: i32) -> (i32, i32, i32) {
    %c0_i32 = arith.constant 0 : i32
    %c0_i32_0 = arith.constant 0 : i32
    return %arg0, %c0_i32, %arg1 : i32, i32, i32
  }
  func.func @transform_1(%arg0: i32, %arg1: i32) -> (i32, i32, i32) {
    %c0_i32 = arith.constant 0 : i32
    %c0_i32_0 = arith.constant 0 : i32
    %c0_i32_1 = arith.constant 0 : i32
    return %arg0, %c0_i32, %c0_i32_0 : i32, i32, i32
  }
  func.func @transform_2(%arg0: i32, %arg1: i32) -> (i32, i32, i32) {
    %c0_i32 = arith.constant 0 : i32
    %c0_i32_0 = arith.constant 0 : i32
    %c0_i32_1 = arith.constant 0 : i32
    return %arg0, %c0_i32, %c0_i32_0 : i32, i32, i32
  }
  func.func @transform_3(%arg0: i32, %arg1: i32) -> (i32, i32, i32) {
    %c0_i32 = arith.constant 0 : i32
    %c0_i32_0 = arith.constant 0 : i32
    %c0_i32_1 = arith.constant 0 : i32
    return %arg0, %c0_i32, %c0_i32_0 : i32, i32, i32
  }
  func.func @transform_4(%arg0: i32, %arg1: i32) -> (i32, i32, i32) {
    %c0_i32 = arith.constant 0 : i32
    %c0_i32_0 = arith.constant 0 : i32
    return %arg0, %c0_i32, %arg1 : i32, i32, i32
  }
}

</mosaic_0001>

<bundles_post_ra>
// kernel: tpu_custom_call.1
= control target key start
LH: loop header
LB: loop body
LE: loop exit
PB: predicated region body
PF: predicated region fallthrough
CT: control target
= control target key end

     0   :  { %s1079_s15 = smov 0   ;;  %s1081_s16 = smov 0   ;;  %s1406_s0 = inlined_call_operand.vmem [shape: f32[2,1,8], index: 0, kind: input, shape index: {}]   ;;  %s1407_s1 = inlined_call_operand.vmem [shape: f32[2,32,1], index: 1, kind: input, shape index: {}]   ;;  %s1408_s2 = inlined_call_operand.vmem [shape: f32[2,32,1], index: 2, kind: input, shape index: {}]   ;;  %s1409_s3 = inlined_call_operand.vmem [shape: f32[2,32,16], index: 3, kind: input, shape index: {}]   ;;  %s1410_s4 = inlined_call_operand.vmem [shape: f32[2,32,8], index: 4, kind: output, shape index: {}]  }
   0x1   :  { %s1083_s17 = smov 0  }
   0x2 LB: > { %s26_s18 = sadd.s32 1, %s1031_s16  ;;  %p904_p0 = scmp.ge.s32.totalorder %s1035_s17, 1  ;;  %s1035_s17 = sphi %s1083_s17, %s14_s17   ;;  %s1031_s16 = sphi %s1081_s16, %s1412_s16   ;;  %s1027_s15 = sphi %s1079_s15, %s1411_s15  }
   0x3   : > { %p28_p1 = scmp.ge.s32.totalorder %s26_s18, 2  ;;  %p209_p2 = scmp.lt.s32.totalorder %s1035_s17, 3 }
   0x5   : > { %s1414_s18 = smov (%p28_p1, %s26_s18), 0  ;;  %p210_p3 = pnand %p904_p0, %p209_p2 }
   0x6   : > { %p254_p4 = scmp.lt.s32.totalorder (!%p210_p3), %s1027_s15, 1 }
   0x7   : > { %213 = sbr.rel (%p210_p3) target bundleno = 369 (0x171), region = 36 }
   0xc   : > { %v1037_v0 = vmov 4   ;;  %v1038_v1 = vmov 0   ;;  %s1416_s15 = smov (!%p254_p4, %s1027_s15), 1  ;;  %v1039_v6 = vmov 8   ;;  %v1040_v7 = vmov 1  }
   0xd   : > { %968 = vset.pattern.permute.xlu0 %v1037_v0  ;;  %966 = vset.pattern.permute.xlu1 %v1038_v1  ;;  %s1101_s19 = sshll.u32 %s1416_s15, 5  ;;  %v1041_v8 = vmov 5   ;;  %v1042_v9 = vmov 12   ;;  %v1043_v10 = vmov 9   ;;  %v1044_v11 = vmov 13   ;;  %s1137_s25 = scalar_lea.vmem %s1406_s0, %s1416_s15 }
   0xe   : > { %967 = vset.pattern.permute.xlu2 %v1037_v0  ;;  %s274_s22 = scalar_lea.vmem %s1409_s3, %s1101_s19  ;;  %v1045_v12 = vmov 6   ;;  %v283_v13 = vld [vmem:[%s1137_s25] sm:$0x1]  ;;  %v1046_v16 = vmov 10   ;;  %v1047_v18 = vmov 14   ;;  %v1048_v21 = vmov 3   ;;  %s1237_s28 = scalar_lea.vmem %s1407_s1, %s1101_s19 }
   0xf   : > { %v1107_v2 = vld [vmem:[%s274_s22 + $0x10] sm:$0xff]  ;;  %v1109_v3 = vld [vmem:[%s274_s22] sm:$0xff]  ;;  %v1114_v4 = vld [vmem:[%s274_s22 + $0x18] sm:$0xff]  ;;  %v296_v14 = vmul.f32 4.0, %v283_v13  ;;  %v1049_v22 = vmov 0.0   ;;  %v1050_v25 = vmov 11   ;;  %s1243_s5 = scalar_lea.vmem %s1408_s2, %s1101_s19  ;;  %s282_s8 = scalar_lea.vmem %s1410_s4, %s1101_s19 }
  0x10   : > { %351 = vperm.xlu0 %968, %v1107_v2   ;;  %327 = vperm.xlu1 %966, %v1107_v2   ;;  %v1116_v5 = vld [vmem:[%s274_s22 + $0x8] sm:$0xff]  ;;  %v1051_v28 = vmov 15   ;;  %v1052_v31 = vmov 2   ;;  %vm782_vm6 = vcmask 64512  }
  0x11   : > { %343 = vperm.xlu2 %967, %v1109_v3   ;;  %v297_v15 = vfloor.f32 %v296_v14 }
  0x13   : > { %v924_v17 = vcvt.f32.s32 %v297_v15 }
  0x15   : > { %vm299_vm0 = vcmp.gt.s32.totalorder %v924_v17, 0 }
  0x16   : > { %v300_v19 = vsel %vm299_vm0, %v924_v17, 0 }
  0x17   : > { %vm301_vm1 = vcmp.lt.s32.totalorder %v300_v19, 3 }
  0x18   : > { %972 = vset.pattern.permute.xlu0 %v1039_v6  ;;  %332 = vperm.xlu1 %966, %v1114_v4   ;;  %v302_v20 = vsel %vm301_vm1, %v300_v19, 3 }
  0x19   : > { %382 = vperm.xlu0 %972, %v1114_v4   ;;  %347 = vperm.xlu2 %967, %v1116_v5   ;;  %vm306_vm2 = vcmp.eq.s32.totalorder %v302_v20, 1  ;;  %vm309_vm3 = vcmp.eq.s32.totalorder %v302_v20, 2  ;;  %vm303_vm4 = vcmp.eq.s32.totalorder %v302_v20, 0  ;;  %vm312_vm5 = vcmp.eq.s32.totalorder %v302_v20, 3 }
  0x1a   : > { %v914_v23 = vsel %vm306_vm2, 1.0, %v1049_v22  ;;  %v915_v32 = vsel %vm309_vm3, 1.0, %v1049_v22  ;;  %v913_v34 = vsel %vm303_vm4, 1.0, %v1049_v22  ;;  %v916_v47 = vsel %vm312_vm5, 1.0, %v1049_v22 }
  0x1b   : > { %v1158_v24 = vperm.slane %v914_v23, 0  ;;  %v1175_v33 = vperm.slane %v915_v32, 0  ;;  %v1181_v37 = vperm.slane %v913_v34, 0  ;;  %v1195_v51 = vperm.slane %v916_v47, 0 }
  0x20   : > { %969 = vset.pattern.permute.xlu1 %v1037_v0 }
  0x21   : > { %975 = vset.pattern.permute.xlu0 %v1040_v7  ;;  %355 = vperm.xlu1 %969, %v1114_v4  }
  0x22   : > { %970 = vset.pattern.permute.xlu2 %v1039_v6  ;;  %424 = vperm.xlu0 %975, %v1109_v3  }
  0x23   : > { %370 = vperm.xlu2 %970, %v1109_v3  }
  0x29   : > { %971 = vset.pattern.permute.xlu1 %v1039_v6 }
  0x2a   : > { %374 = vperm.xlu1 %971, %v1116_v5   ;;  %979 = vset.pattern.permute.xlu0 %v1041_v8 }
  0x2b   : > { %378 = vperm.xlu2 %970, %v1107_v2   ;;  %448 = vperm.xlu0 %979, %v1116_v5  }
  0x32   : > { %973 = vset.pattern.permute.xlu1 %v1042_v9 }
  0x33   : > { %974 = vset.pattern.permute.xlu2 %v1042_v9  ;;  %983 = vset.pattern.permute.xlu0 %v1043_v10 }
  0x34   : > { %397 = vperm.xlu1 %973, %v1109_v3   ;;  %401 = vperm.xlu2 %974, %v1116_v5  }
  0x35   : > { %476 = vperm.xlu0 %983, %v1107_v2  }
  0x3c   : > { %405 = vperm.xlu1 %973, %v1107_v2   ;;  %409 = vperm.xlu2 %974, %v1114_v4  }
  0x3d   : > { %986 = vset.pattern.permute.xlu0 %v1044_v11 }
  0x3e   : > { %504 = vperm.xlu0 %986, %v1114_v4  }
  0x44   : > { %976 = vset.pattern.permute.xlu1 %v1040_v7  ;;  %977 = vset.pattern.permute.xlu2 %v1040_v7 }
  0x45   : > { %428 = vperm.xlu1 %976, %v1116_v5   ;;  %432 = vperm.xlu2 %977, %v1107_v2  }
  0x46   : > { %989 = vset.pattern.permute.xlu0 %v1045_v12 }
  0x47   : > { %536 = vperm.xlu0 %989, %v1109_v3  }
  0x4d   : > { %436 = vperm.xlu1 %976, %v1114_v4   ;;  %978 = vset.pattern.permute.xlu2 %v1041_v8 }
  0x4e   : > { %444 = vperm.xlu2 %978, %v1109_v3  }
  0x4f   : > { %993 = vset.pattern.permute.xlu0 %v1046_v16 }
  0x50   : > { %564 = vperm.xlu0 %993, %v1116_v5  }
  0x55   : > { %980 = vset.pattern.permute.xlu1 %v1041_v8 }
  0x56   : > { %452 = vperm.xlu1 %980, %v1107_v2   ;;  %456 = vperm.xlu2 %978, %v1114_v4  }
  0x58   : > { %997 = vset.pattern.permute.xlu0 %v1047_v18 }
  0x59   : > { %592 = vperm.xlu0 %997, %v1107_v2  }
  0x5e   : > { %981 = vset.pattern.permute.xlu1 %v1043_v10  ;;  %982 = vset.pattern.permute.xlu2 %v1043_v10 }
  0x5f   : > { %468 = vperm.xlu1 %981, %v1109_v3   ;;  %472 = vperm.xlu2 %982, %v1116_v5  }
  0x61   : > { %1000 = vset.pattern.permute.xlu0 %v1048_v21 }
  0x62   : > { %620 = vperm.xlu0 %1000, %v1114_v4  }
  0x67   : > { %480 = vperm.xlu1 %981, %v1114_v4   ;;  %984 = vset.pattern.permute.xlu2 %v1044_v11 }
  0x68   : > { %492 = vperm.xlu2 %984, %v1109_v3  }
  0x6a   : > { %1003 = vset.pattern.permute.xlu0 %v1050_v25 }
  0x6b   : > { %652 = vperm.xlu0 %1003, %v1109_v3   ;;  %v344_v26 = vpop.permute.xlu2 %343 }
  0x6c   : > { %v1163_v27 = vmul.f32 %v1158_v24, %v344_v26 }
  0x6f   : > { %985 = vset.pattern.permute.xlu1 %v1044_v11 }
  0x70   : > { %496 = vperm.xlu1 %985, %v1116_v5   ;;  %500 = vperm.xlu2 %984, %v1107_v2  }
  0x73   : > { %1007 = vset.pattern.permute.xlu0 %v1051_v28  ;;  %v348_v29 = vpop.permute.xlu2 %347 }
  0x74   : > { %680 = vperm.xlu0 %1007, %v1116_v5   ;;  %v1170_v30 = vmul.f32 %v1158_v24, %v348_v29  ;;  %v1249_v29 = vld [vmem:[%s1237_s28 + $0x10] sm:$0xff] }
  0x78   : > { %987 = vset.pattern.permute.xlu1 %v1052_v31  ;;  %988 = vset.pattern.permute.xlu2 %v1052_v31  ;;  %v290_v31 = vld [vmem:[%s1243_s5 + $0x10] sm:$0xff] }
  0x79   : > { %516 = vperm.xlu1 %987, %v1109_v3   ;;  %520 = vperm.xlu2 %988, %v1116_v5   ;;  %v728_v34 = vsub.f32 %v290_v31, %v1249_v29 }
  0x7c   : > { %1008 = vset.pattern.permute.xlu0 %v1038_v1 }
  0x7d   : > { %317 = vperm.xlu0 %1008, %v1109_v3   ;;  %v371_v35 = vpop.permute.xlu2 %370 }
  0x7e   : > { %v1179_v36 = vmul.f32 %v1175_v33, %v371_v35 }
  0x81   : > { %524 = vperm.xlu1 %987, %v1107_v2   ;;  %528 = vperm.xlu2 %988, %v1114_v4  }
  0x82   : > { %v352_v38 = vpop.permute.xlu0 %351  ;;  %v328_v39 = vpop.permute.xlu1 %327 }
  0x83   : > { %v363_v40 = vmul.f32 %v1158_v24, %v352_v38  ;;  %v340_v41 = vmul.f32 %v1181_v37, %v328_v39 }
  0x85   : > { %v367_v42 = vadd.f32 %v363_v40, %v340_v41  ;;  %322 = vperm.xlu0 %1008, %v1116_v5   ;;  %v379_v43 = vpop.permute.xlu2 %378 }
  0x86   : > { %v390_v44 = vmul.f32 %v1175_v33, %v379_v43 }
  0x88   : > { %v394_v45 = vadd.f32 %v390_v44, %v367_v42  ;;  %v1053_v42 = vmov 7  }
  0x89   : > { %990 = vset.pattern.permute.xlu1 %v1045_v12  ;;  %991 = vset.pattern.permute.xlu2 %v1045_v12 }
  0x8a   : > { %540 = vperm.xlu1 %990, %v1116_v5   ;;  %544 = vperm.xlu2 %991, %v1107_v2   ;;  %v333_v46 = vpop.permute.xlu1 %332 }
  0x8b   : > { %v341_v48 = vmul.f32 %v1181_v37, %v333_v46  ;;  %v383_v49 = vpop.permute.xlu0 %382 }
  0x8c   : > { %v391_v50 = vmul.f32 %v1175_v33, %v383_v49 }
  0x8d   : > { %742 = vperm.xlu0 %1008, %v728_v34  }
  0x8e   : > { %v402_v52 = vpop.permute.xlu2 %401 }
  0x8f   : > { %v1198_v53 = vmul.f32 %v1195_v51, %v402_v52 }
  0x92   : > { %548 = vperm.xlu1 %990, %v1114_v4   ;;  %992 = vset.pattern.permute.xlu2 %v1046_v16 }
  0x93   : > { %560 = vperm.xlu2 %992, %v1109_v3   ;;  %v356_v54 = vpop.permute.xlu1 %355 }
  0x94   : > { %v364_v55 = vmul.f32 %v1158_v24, %v356_v54  ;;  %v425_v56 = vpop.permute.xlu0 %424 }
  0x95   : > { %v439_v57 = vmul.f32 %v425_v56, %v1181_v37 }
  0x96   : > { %v368_v58 = vadd.f32 %v364_v55, %v341_v48  ;;  %v410_v59 = vpop.permute.xlu2 %409 }
  0x97   : > { %v418_v60 = vmul.f32 %v1195_v51, %v410_v59 }
  0x98   : > { %v395_v61 = vadd.f32 %v391_v50, %v368_v58 }
  0x9a   : > { %v1206_v62 = vadd.f32 %v418_v60, %v395_v61  ;;  %994 = vset.pattern.permute.xlu1 %v1046_v16 }
  0x9b   : > { %568 = vperm.xlu1 %994, %v1107_v2   ;;  %572 = vperm.xlu2 %992, %v1114_v4  }
  0x9c   : > { %v375_v63 = vpop.permute.xlu1 %374 }
  0x9d   : > { %v1212_v0 = vmul.f32 %v1175_v33, %v375_v63  ;;  %v449_v6 = vpop.permute.xlu0 %448 }
  0x9e   : > { %v460_v7 = vmul.f32 %v449_v6, %v1158_v24 }
  0x9f   : > { %v433_v8 = vpop.permute.xlu2 %432 }
  0xa0   : > { %v441_v9 = vmul.f32 %v433_v8, %v1181_v37 }
  0xa3   : > { %995 = vset.pattern.permute.xlu1 %v1047_v18  ;;  %996 = vset.pattern.permute.xlu2 %v1047_v18 }
  0xa4   : > { %584 = vperm.xlu1 %995, %v1109_v3   ;;  %588 = vperm.xlu2 %996, %v1116_v5  }
  0xa6   : > { %v398_v10 = vpop.permute.xlu1 %397 }
  0xa7   : > { %v1221_v11 = vmul.f32 %v1195_v51, %v398_v10  ;;  %v477_v12 = vpop.permute.xlu0 %476 }
  0xa8   : > { %v445_v13 = vpop.permute.xlu2 %444  ;;  %v485_v14 = vmul.f32 %v477_v12, %v1175_v33 }
  0xa9   : > { %v459_v15 = vmul.f32 %v445_v13, %v1158_v24 }
  0xab   : > { %v463_v16 = vadd.f32 %v459_v15, %v439_v57 }
  0xac   : > { %596 = vperm.xlu1 %995, %v1114_v4   ;;  %998 = vset.pattern.permute.xlu2 %v1048_v21 }
  0xad   : > { %608 = vperm.xlu2 %998, %v1109_v3  }
  0xae   : > { %v406_v17 = vpop.permute.xlu1 %405 }
  0xaf   : > { %v417_v18 = vmul.f32 %v1195_v51, %v406_v17 }
  0xb0   : > { %v457_v19 = vpop.permute.xlu2 %456  ;;  %v505_v20 = vpop.permute.xlu0 %504 }
  0xb1   : > { %v1229_v22 = vadd.f32 %v417_v18, %v394_v45  ;;  %v462_v23 = vmul.f32 %v457_v19, %v1158_v24  ;;  %v510_v26 = vmul.f32 %v505_v20, %v1195_v51  ;;  %v1261_v45 = vld [vmem:[%s1237_s28 + $0x18] sm:$0xff]  ;;  %v285_v18 = vld [vmem:[%s1237_s28 + $0x8] sm:$0xff] }
  0xb2   : > { %771 = vperm.xlu0 %1008, %v1261_v45   ;;  %v289_v19 = vld [vmem:[%s1243_s5 + $0x8] sm:$0xff] }
  0xb3   : > { %v727_v34 = vsub.f32 %v289_v19, %v285_v18 }
  0xb4   : > { %999 = vset.pattern.permute.xlu1 %v1048_v21 }
  0xb5   : > { %612 = vperm.xlu1 %999, %v1116_v5   ;;  %616 = vperm.xlu2 %998, %v1107_v2  }
  0xb7   : > { %v429_v32 = vpop.permute.xlu1 %428 }
  0xb8   : > { %v440_v35 = vmul.f32 %v429_v32, %v1181_v37 }
  0xb9   : > { %v473_v38 = vpop.permute.xlu2 %472  ;;  %v1254_v39 = vpop.permute.xlu0 %536 }
  0xba   : > { %v464_v40 = vadd.f32 %v460_v7, %v440_v35  ;;  %v484_v21 = vmul.f32 %v473_v38, %v1175_v33 }
  0xbc   : > { %v488_v41 = vadd.f32 %v484_v21, %v464_v40 }
  0xbd   : > { %1001 = vset.pattern.permute.xlu1 %v1053_v42  ;;  %1002 = vset.pattern.permute.xlu2 %v1053_v42 }
  0xbe   : > { %628 = vperm.xlu1 %1001, %v1109_v3   ;;  %632 = vperm.xlu2 %1002, %v1116_v5  }
  0xbf   : > { %v437_v43 = vpop.permute.xlu1 %436 }
  0xc0   : > { %v442_v44 = vmul.f32 %v437_v43, %v1181_v37 }
  0xc2   : > { %v466_v46 = vadd.f32 %v462_v23, %v442_v44  ;;  %v493_v47 = vpop.permute.xlu2 %492  ;;  %v1264_v48 = vpop.permute.xlu0 %564 }
  0xc3   : > { %v507_v49 = vmul.f32 %v493_v47, %v1195_v51 }
  0xc6   : > { %636 = vperm.xlu1 %1001, %v1107_v2   ;;  %640 = vperm.xlu2 %1002, %v1114_v4  }
  0xc8   : > { %v453_v50 = vpop.permute.xlu1 %452 }
  0xc9   : > { %v461_v52 = vmul.f32 %v453_v50, %v1158_v24 }
  0xca   : > { %v501_v54 = vpop.permute.xlu2 %500 }
  0xcb   : > { %v465_v55 = vadd.f32 %v461_v52, %v441_v9  ;;  %v509_v56 = vmul.f32 %v501_v54, %v1195_v51  ;;  %v1271_v57 = vpop.permute.xlu0 %592 }
  0xcd   : > { %v489_v58 = vadd.f32 %v485_v14, %v465_v55 }
  0xce   : > { %1004 = vset.pattern.permute.xlu1 %v1050_v25  ;;  %1005 = vset.pattern.permute.xlu2 %v1050_v25 }
  0xcf   : > { %v1275_v59 = vadd.f32 %v509_v56, %v489_v58  ;;  %656 = vperm.xlu1 %1004, %v1116_v5   ;;  %660 = vperm.xlu2 %1005, %v1107_v2  }
  0xd1   : > { %v469_v60 = vpop.permute.xlu1 %468 }
  0xd2   : > { %v483_v61 = vmul.f32 %v469_v60, %v1175_v33 }
  0xd3   : > { %v521_v63 = vpop.permute.xlu2 %520 }
  0xd4   : > { %v487_v6 = vadd.f32 %v483_v61, %v463_v16  ;;  %v1281_v7 = vmul.f32 %v521_v63, %v1181_v37  ;;  %v1283_v8 = vpop.permute.xlu0 %620  ;;  %v284_v16 = vld [vmem:[%s1237_s28] sm:$0xff] }
  0xd6   : > { %v1285_v9 = vadd.f32 %v507_v49, %v487_v6 }
  0xd7   : > { %664 = vperm.xlu1 %1004, %v1114_v4   ;;  %1006 = vset.pattern.permute.xlu2 %v1051_v28 }
  0xd8   : > { %676 = vperm.xlu2 %1006, %v1109_v3   ;;  %v288_v3 = vld [vmem:[%s1243_s5] sm:$0xff] }
  0xd9   : > { %v481_v5 = vpop.permute.xlu1 %480  ;;  %v726_v32 = vsub.f32 %v288_v3, %v284_v16 }
  0xda   : > { %v486_v25 = vmul.f32 %v481_v5, %v1175_v33 }
  0xdb   : > { %v529_v10 = vpop.permute.xlu2 %528 }
  0xdc   : > { %v490_v12 = vadd.f32 %v486_v25, %v466_v46  ;;  %v534_v13 = vmul.f32 %v529_v10, %v1181_v37 }
  0xdd   : > { %v1292_v14 = vpop.permute.xlu0 %652 }
  0xde   : > { %v1294_v15 = vadd.f32 %v510_v26, %v490_v12 }
  0xdf   : > { %1009 = vset.pattern.permute.xlu1 %v1051_v28 }
  0xe0   : > { %684 = vperm.xlu1 %1009, %v1107_v2   ;;  %688 = vperm.xlu2 %1006, %v1114_v4   ;;  %v551_v2 = vmul.f32 %v1254_v39, %v1158_v24  ;;  %v291_v4 = vld [vmem:[%s1243_s5 + $0x18] sm:$0xff] }
  0xe1   : > { %v729_v40 = vsub.f32 %v291_v4, %v1261_v45 }
  0xe2   : > { %v497_v17 = vpop.permute.xlu1 %496 }
  0xe3   : > { %v508_v20 = vmul.f32 %v497_v17, %v1195_v51 }
  0xe4   : > { %v545_v23 = vpop.permute.xlu2 %544 }
  0xe5   : > { %v1304_v31 = vadd.f32 %v508_v20, %v488_v41  ;;  %v553_v26 = vmul.f32 %v545_v23, %v1158_v24 }
  0xe6   : > { %v1307_v28 = vpop.permute.xlu0 %680 }
  0xe8   : > { %1010 = vset.pattern.permute.xlu1 %v1038_v1  ;;  %1011 = vset.pattern.permute.xlu2 %v1038_v1 }
  0xe9   : > { %732 = vperm.xlu1 %1010, %v726_v32   ;;  %737 = vperm.xlu2 %1011, %v727_v34  }
  0xeb   : > { %v517_v35 = vpop.permute.xlu1 %516 }
  0xec   : > { %v531_v38 = vmul.f32 %v517_v35, %v1181_v37 }
  0xed   : > { %v561_v21 = vpop.permute.xlu2 %560 }
  0xee   : > { %v555_v41 = vadd.f32 %v551_v2, %v531_v38  ;;  %v575_v42 = vmul.f32 %v561_v21, %v1175_v33  ;;  %v667_v38 = vmul.f32 %v1292_v14, %v1175_v33 }
  0xef   : > { %v318_v43 = vpop.permute.xlu0 %317 }
  0xf0   : > { %v579_v44 = vadd.f32 %v575_v42, %v555_v41  ;;  %v338_v46 = vmul.f32 %v1181_v37, %v318_v43 }
  0xf1   : > { %747 = vperm.xlu1 %1010, %v729_v40   ;;  %756 = vperm.xlu2 %1011, %v284_v16  }
  0xf2   : > { %v365_v1 = vadd.f32 %v1163_v27, %v338_v46 }
  0xf3   : > { %v525_v47 = vpop.permute.xlu1 %524 }
  0xf4   : > { %v392_v39 = vadd.f32 %v1179_v36, %v365_v1  ;;  %v533_v49 = vmul.f32 %v525_v47, %v1181_v37  ;;  %v576_v36 = vmul.f32 %v1264_v48, %v1175_v33  ;;  %v601_v48 = vmul.f32 %v1271_v57, %v1195_v51 }
  0xf5   : > { %v573_v50 = vpop.permute.xlu2 %572 }
  0xf6   : > { %v419_v45 = vadd.f32 %v1221_v11, %v392_v39  ;;  %v557_v52 = vadd.f32 %v553_v26, %v533_v49  ;;  %v578_v54 = vmul.f32 %v573_v50, %v1175_v33 }
  0xf7   : > { %v323_v55 = vpop.permute.xlu0 %322 }
  0xf8   : > { %v339_v56 = vmul.f32 %v1181_v37, %v323_v55 }
  0xf9   : > { %761 = vperm.xlu1 %1010, %v285_v18   ;;  %766 = vperm.xlu2 %1011, %v1249_v29  }
  0xfa   : > { %v366_v58 = vadd.f32 %v1170_v30, %v339_v56 }
  0xfc   : > { %v393_v27 = vadd.f32 %v1212_v0, %v366_v58  ;;  %v541_v60 = vpop.permute.xlu1 %540 }
  0xfd   : > { %v552_v61 = vmul.f32 %v541_v60, %v1158_v24 }
  0xfe   : > { %v589_v11 = vpop.permute.xlu2 %588  ;;  %v1331_v63 = vadd.f32 %v1198_v53, %v393_v27  ;;  %v692_v27 = vmul.f32 %v1307_v28, %v1195_v51 }
  0xff   : > { %v556_v6 = vadd.f32 %v552_v61, %v1281_v7  ;;  %v600_v5 = vmul.f32 %v589_v11, %v1195_v51 }
 0x101   : > { %v580_v25 = vadd.f32 %v576_v36, %v556_v6  ;;  %v626_v6 = vmul.f32 %v1283_v8, %v1181_v37 }
 0x103   : > { %v604_v29 = vadd.f32 %v600_v5, %v580_v25 }
 0x104   : > { %v549_v10 = vpop.permute.xlu1 %548 }
 0x105   : > { %v554_v30 = vmul.f32 %v549_v10, %v1158_v24 }
 0x107   : > { %v558_v0 = vadd.f32 %v554_v30, %v534_v13  ;;  %v609_v12 = vpop.permute.xlu2 %608 }
 0x108   : > { %v623_v40 = vmul.f32 %v609_v12, %v1181_v37 }
 0x109   : > { %v582_v16 = vadd.f32 %v578_v54, %v558_v0 }
 0x10d   : > { %v569_v17 = vpop.permute.xlu1 %568 }
 0x10e   : > { %v577_v3 = vmul.f32 %v569_v17, %v1175_v33 }
 0x10f   : > { %v617_v53 = vpop.permute.xlu2 %616 }
 0x110   : > { %v581_v18 = vadd.f32 %v577_v3, %v557_v52  ;;  %v625_v8 = vmul.f32 %v617_v53, %v1181_v37 }
 0x112   : > { %v1339_v19 = vadd.f32 %v601_v48, %v581_v18 }
 0x116   : > { %v585_v7 = vpop.permute.xlu1 %584 }
 0x117   : > { %v599_v20 = vmul.f32 %v585_v7, %v1195_v51 }
 0x118   : > { %v633_v23 = vpop.permute.xlu2 %632 }
 0x119   : > { %v603_v26 = vadd.f32 %v599_v20, %v579_v44  ;;  %v1349_v44 = vld [vmem:[%s1137_s25] ss:$0 sm:$0xff]  ;;  %v644_v14 = vmul.f32 %v633_v23, %v1158_v24 }
 0x11e   : > { %v597_v32 = vpop.permute.xlu1 %596 }
 0x11f   : > { %v602_v13 = vmul.f32 %v597_v32, %v1195_v51 }
 0x120   : > { %v641_v34 = vpop.permute.xlu2 %640 }
 0x121   : > { %v606_v2 = vadd.f32 %v602_v13, %v582_v16  ;;  %v646_v5 = vmul.f32 %v641_v34, %v1158_v24 }
 0x123   : > { %v650_v30 = vadd.f32 %v646_v5, %v626_v6 }
 0x127   : > { %v613_v4 = vpop.permute.xlu1 %612 }
 0x128   : > { %v624_v52 = vmul.f32 %v613_v4, %v1181_v37 }
 0x129   : > { %v661_v35 = vpop.permute.xlu2 %660 }
 0x12a   : > { %v648_v60 = vadd.f32 %v644_v14, %v624_v52  ;;  %v669_v7 = vmul.f32 %v661_v35, %v1175_v33 }
 0x130   : > { %v629_v57 = vpop.permute.xlu1 %628 }
 0x131   : > { %v643_v21 = vmul.f32 %v629_v57, %v1158_v24 }
 0x132   : > { %v677_v41 = vpop.permute.xlu2 %676 }
 0x133   : > { %v647_v42 = vadd.f32 %v643_v21, %v623_v40  ;;  %v691_v43 = vmul.f32 %v677_v41, %v1195_v51 }
 0x135   : > { %v671_v46 = vadd.f32 %v667_v38, %v647_v42  ;;  %v743_v38 = vpop.permute.xlu0 %742 }
 0x136   : > { %v752_v21 = vmul.f32 %v1349_v44, %v743_v38 }
 0x137   : > { %v695_v1 = vadd.f32 %v691_v43, %v671_v46 }
 0x138   : > { %v637_v47 = vpop.permute.xlu1 %636 }
 0x139   : > { %v702_v39 = vmul.f32 %v1349_v44, %v695_v1  ;;  %v645_v17 = vmul.f32 %v637_v47, %v1158_v24 }
 0x13a   : > { %v689_v55 = vpop.permute.xlu2 %688 }
 0x13b   : > { %v706_v49 = vadd.f32 %v702_v39, %v603_v26  ;;  %v694_v0 = vmul.f32 %v689_v55, %v1195_v51  ;;  %v649_v20 = vadd.f32 %v645_v17, %v625_v8 }
 0x13d   : > { %v710_v50 = vmul.f32 %v1349_v44, %v706_v49  ;;  %v673_v24 = vadd.f32 %v669_v7, %v649_v20 }
 0x13f   : > { %v714_v54 = vadd.f32 %v710_v50, %v1285_v9 }
 0x141   : > { %v657_v56 = vpop.permute.xlu1 %656  ;;  %v718_v58 = vmul.f32 %v1349_v44, %v714_v54 }
 0x142   : > { %v668_v36 = vmul.f32 %v657_v56, %v1175_v33 }
 0x143   : > { %v722_v61 = vadd.f32 %v718_v58, %v419_v45  ;;  %v738_v16 = vpop.permute.xlu2 %737 }
 0x144   : > { %v672_v11 = vadd.f32 %v668_v36, %v648_v60  ;;  %v751_v14 = vmul.f32 %v1349_v44, %v738_v16 }
 0x146   : > { %v696_v25 = vadd.f32 %v692_v27, %v672_v11 }
 0x148   : > { %v703_v9 = vmul.f32 %v1349_v44, %v696_v25 }
 0x149   : > { %v665_v10 = vpop.permute.xlu1 %664 }
 0x14a   : > { %v707_v12 = vadd.f32 %v703_v9, %v604_v29  ;;  %v670_v28 = vmul.f32 %v665_v10, %v1175_v33 }
 0x14b   : > { %v757_v37 = vpop.permute.xlu2 %756 }
 0x14c   : > { %v674_v45 = vadd.f32 %v670_v28, %v650_v30  ;;  %v711_v48 = vmul.f32 %v1349_v44, %v707_v12 }
 0x14e   : > { %v698_v3 = vadd.f32 %v694_v0, %v674_v45  ;;  %v715_v18 = vadd.f32 %v711_v48, %v1304_v31 }
 0x150   : > { %v705_v23 = vmul.f32 %v1349_v44, %v698_v3  ;;  %v719_v29 = vmul.f32 %v1349_v44, %v715_v18 }
 0x152   : > { %v709_v26 = vadd.f32 %v705_v23, %v606_v2  ;;  %v685_v32 = vpop.permute.xlu1 %684  ;;  %v723_v13 = vadd.f32 %v719_v29, %v1331_v63 }
 0x153   : > { %v693_v34 = vmul.f32 %v685_v32, %v1195_v51  ;;  %v767_v42 = vpop.permute.xlu2 %766 }
 0x154   : > { %v713_v4 = vmul.f32 %v1349_v44, %v709_v26  ;;  %v776_v46 = vadd.f32 %v767_v42, %v752_v21 }
 0x155   : > { %v697_v53 = vadd.f32 %v693_v34, %v673_v24 }
 0x156   : > { %v717_v31 = vadd.f32 %v713_v4, %v1294_v15 }
 0x157   : > { %v704_v33 = vmul.f32 %v1349_v44, %v697_v53 }
 0x158   : > { %v721_v35 = vmul.f32 %v1349_v44, %v717_v31 }
 0x159   : > { %v708_v57 = vadd.f32 %v704_v33, %v1339_v19 }
 0x15a   : > { %v725_v2 = vadd.f32 %v721_v35, %v1206_v62 }
 0x15b   : > { %v712_v63 = vmul.f32 %v1349_v44, %v708_v57  ;;  %v733_v40 = vpop.permute.xlu1 %732 }
 0x15c   : > { %v750_v51 = vmul.f32 %v1349_v44, %v733_v40 }
 0x15d   : > { %v716_v41 = vadd.f32 %v712_v63, %v1275_v59  ;;  %v772_v59 = vpop.permute.xlu0 %771 }
 0x15e   : > { %v774_v15 = vadd.f32 %v757_v37, %v750_v51 }
 0x15f   : > { %v720_v19 = vmul.f32 %v1349_v44, %v716_v41 }
 0x160   : > { %v778_v62 = vadd.f32 %v774_v15, %v722_v61 }
 0x161   : > { %v724_v43 = vadd.f32 %v720_v19, %v1229_v22 }
 0x162   : > { %783 = vst.msk [vmem:[%s282_s8] sm:$0xff] %vm782_vm6, %v778_v62 }
 0x163   : > { %v780_v1 = vadd.f32 %v776_v46, %v724_v43  ;;  %v748_v47 = vpop.permute.xlu1 %747 }
 0x164   : > { %v753_v39 = vmul.f32 %v1349_v44, %v748_v47 }
 0x165   : > { %785 = vst.msk [vmem:[%s282_s8 + $0x10] sm:$0xff] %vm782_vm6, %v780_v1 }
 0x166   : > { %v777_v49 = vadd.f32 %v772_v59, %v753_v39 }
 0x168   : > { %v781_v50 = vadd.f32 %v777_v49, %v725_v2 }
 0x16a   : > { %786 = vst.msk [vmem:[%s282_s8 + $0x18] sm:$0xff] %vm782_vm6, %v781_v50 }
 0x16b   : > { %v762_v52 = vpop.permute.xlu1 %761 }
 0x16c   : > { %v775_v54 = vadd.f32 %v762_v52, %v751_v14 }
 0x16e   : > { %v779_v55 = vadd.f32 %v775_v54, %v723_v13 }
 0x170   : > { %784 = vst.msk [vmem:[%s282_s8 + $0x8] sm:$0xff] %vm782_vm6, %v779_v55 }
 0x171 PF: > { %s14_s17 = sadd.s32 1, %s1035_s17   ;;  %s1411_s15 = smov %s1031_s16 }
 0x172   : > { %p11_p5 = scmp.ge.s32.totalorder %s14_s17, 4   ;;  %s1412_s16 = smov %s1414_s18 }
 0x174   :  { %13 = sbr.rel (!%p11_p5) target bundleno = 2 (0x2), region = 75 }

</bundles_post_ra>
